<compile_context>
chip_gen: v7x
topology: tpu7x:2x2x1
jax: 0.10.0
libtpu: 0.0.40
codegen_flags: <defaults>
</compile_context>

<pallas_src>
import jax
import jax.numpy as jnp
from jax.experimental import pallas as pl
from jax.experimental.pallas import tpu as pltpu

_LEAKY_SLOPE = 0.01   # nn.LeakyReLU default
_BN_EPS = 1e-5        # nn.BatchNorm1d default


def _round_up(x, m):
    return ((x + m - 1) // m) * m


def _make_mlp_kernel(num_layers):
    """Kernel: x tile -> nan_to_num -> L x (bf16 matmul, +shift, LeakyReLU)."""

    def kernel(*refs):
        x_ref = refs[0]
        layer_refs = refs[1:1 + 2 * num_layers]
        o_ref = refs[1 + 2 * num_layers]

        # torch.nan_to_num(x, nan=0): NaN -> 0, +/-inf -> finite.  Clamp to the
        # bf16 max (not f32 max) so the bf16 cast below cannot round to inf.
        x = x_ref[...].astype(jnp.float32)
        fmax = jnp.float32(jnp.finfo(jnp.bfloat16).max)
        x = jnp.where(jnp.isnan(x), jnp.float32(0.0), x)
        x = jnp.clip(x, -fmax, fmax)
        h = x.astype(jnp.bfloat16)

        for i in range(num_layers):
            w_ref, b_ref = layer_refs[2 * i:2 * i + 2]
            # Linear(bias=False) with the BN scale pre-folded into W:
            # bf16 operands on the MXU, f32 accumulation.
            acc = jnp.dot(h, w_ref[...], preferred_element_type=jnp.float32)
            # BN shift + LeakyReLU epilogue in bf16; max-form LeakyReLU.
            y = acc.astype(jnp.bfloat16) + b_ref[...]
            h = jnp.maximum(y, _LEAKY_SLOPE * y)

        o_ref[...] = h  # bf16 store, exactly out_dim columns

    return kernel


def init_params(key, dims):
    """Synthetic deterministic params per LinearLayer: (W[in,out], gamma, beta, mean, var)."""
    params = []
    keys = jax.random.split(key, len(dims) - 1)
    for i in range(len(dims) - 1):
        kw, kg, kb, km, kv = jax.random.split(keys[i], 5)
        fan_in, fan_out = dims[i], dims[i + 1]
        bound = 1.0 / (fan_in ** 0.5)
        w = jax.random.uniform(kw, (fan_in, fan_out), jnp.float32, -bound, bound)
        gamma = jax.random.uniform(kg, (fan_out,), jnp.float32, 0.5, 1.5)
        beta = 0.1 * jax.random.normal(kb, (fan_out,), jnp.float32)
        mean = 0.1 * jax.random.normal(km, (fan_out,), jnp.float32)
        var = jax.random.uniform(kv, (fan_out,), jnp.float32, 0.5, 1.5)
        params.append((w, gamma, beta, mean, var))
    return params


def prepare_params(raw_params, eps=_BN_EPS):
    """Fold eval-mode BN into the layer: (x@W)*s + b == x@(W*s) + b.

    Returns per-layer (W_folded[bf16, in x out], shift[bf16, 1 x out]).
    """
    prepped = []
    for (w, gamma, beta, mean, var) in raw_params:
        scale = gamma / jnp.sqrt(var + eps)
        shift = beta - mean * scale
        w_folded = (w * scale[None, :]).astype(jnp.bfloat16)
        b = shift[None, :].astype(jnp.bfloat16)
        prepped.append((w_folded, b))
    return prepped


def mlp_container_forward(x, prepped_params, out_dim, *, tm=1024):
    """Forward of MlpContainer. x: (batch, temp, ..., f_in). Returns (out, pad_mask)."""
    batch, temp = x.shape[:2]
    x_sq = jnp.squeeze(x, axis=1) if temp == 1 else x

    # pad_mask = (x.squeeze(1) == 0).squeeze(-1): trivial elementwise, in the wrapper.
    pad_mask = x_sq == 0
    if pad_mask.shape[-1] == 1:
        pad_mask = jnp.squeeze(pad_mask, axis=-1)

    row_shape = (batch * temp,) + x_sq.shape[1:]   # shape after x.view(batch*temp, ...)
    f_in = row_shape[-1]
    m = 1
    for d in row_shape[:-1]:
        m *= d

    # Flatten to rows (metadata reshape); cast + nan_to_num happen inside the kernel.
    x_rows = jnp.reshape(x_sq, (m, f_in))

    num_layers = len(prepped_params)
    assert prepped_params[-1][0].shape[1] == out_dim
    max_width = max(w.shape[1] for (w, _) in prepped_params)
    param_bytes = sum(int(w.size) * w.dtype.itemsize + int(b.size) * b.dtype.itemsize
                      for (w, b) in prepped_params)

    # Generation-aware VMEM budget: physical capacity minus ~20% headroom for
    # Mosaic internal scratch (works out to ~51 MiB on v7x, ~102 MiB on v5e/v6e).
    try:
        vmem_cap = int(pltpu.get_tpu_info().vmem_capacity_bytes)
    except Exception:  # fall back to the smallest (v7x per-TC) size
        vmem_cap = 64 * 1024 * 1024
    vmem_budget = (vmem_cap * 4) // 5

    def _vmem_needed(rows):
        act_in = 2 * rows * f_in * x_rows.dtype.itemsize    # double-buffered input tile
        act_out = 2 * rows * out_dim * 2                    # double-buffered bf16 output tile
        interm = 2 * rows * max_width * 4                   # f32 accumulator + bf16 temps
        return act_in + act_out + interm + 2 * param_bytes  # params double-buffered by default

    # Row tile: multiple of 16 sublanes (bf16 LHS packing); big tiles amortize the
    # per-grid-step overhead.  No wrapper-side pad: grid = cdiv(m, tm) masks the tail.
    tm_eff = min(tm, _round_up(m, 16))
    tm_eff = max(16, (tm_eff // 16) * 16)
    while tm_eff > 16 and _vmem_needed(tm_eff) > vmem_budget:
        tm_eff = max(16, (tm_eff // 2 // 16) * 16)
    grid = (pl.cdiv(m, tm_eff),)

    in_specs = [pl.BlockSpec((tm_eff, f_in), lambda i: (i, 0))]
    operands = [x_rows]
    for (w_p, b_p) in prepped_params:
        # Constant index_maps: parameters DMA'd once, VMEM-resident across row tiles.
        in_specs += [pl.BlockSpec(w_p.shape, lambda i: (0, 0)),
                     pl.BlockSpec(b_p.shape, lambda i: (0, 0))]
        operands += [w_p, b_p]
    out_spec = pl.BlockSpec((tm_eff, out_dim), lambda i: (i, 0))

    # Advisory cost estimate so XLA can overlap surrounding ops with this call.
    flops = sum(2 * m * w.shape[0] * w.shape[1] for (w, _) in prepped_params)
    bytes_accessed = (m * f_in * x_rows.dtype.itemsize + m * out_dim * 2 + param_bytes)
    cost = pl.CostEstimate(flops=int(flops), transcendentals=0,
                           bytes_accessed=int(bytes_accessed))

    vmem_bytes = int(min(vmem_budget, max(32 * 1024 * 1024, _vmem_needed(tm_eff))))

    out_rows = pl.pallas_call(
        _make_mlp_kernel(num_layers),
        out_shape=jax.ShapeDtypeStruct((m, out_dim), jnp.bfloat16),
        grid_spec=pltpu.PrefetchScalarGridSpec(
            num_scalar_prefetch=0,
            grid=grid,
            in_specs=in_specs,
            out_specs=out_spec,
        ),
        compiler_params=pltpu.CompilerParams(
            dimension_semantics=("parallel",),   # row tiles independent (megacore-shardable)
            vmem_limit_bytes=vmem_bytes,
        ),
        cost_estimate=cost,
    )(*operands)

    # (m, out_dim) -> (batch*temp, ..., out_dim): metadata-only reshape, no slice copy.
    out = jnp.reshape(out_rows, row_shape[:-1] + (out_dim,))
    return out, pad_mask


def mlp_container_ref(x, raw_params):
    """Pure-JAX f32 reference matching the PyTorch forward (eval-mode BatchNorm)."""
    batch, temp = x.shape[:2]
    x_sq = jnp.squeeze(x, axis=1) if temp == 1 else x
    pad_mask = x_sq == 0
    if pad_mask.shape[-1] == 1:
        pad_mask = jnp.squeeze(pad_mask, axis=-1)
    out = jnp.reshape(x_sq, (batch * temp,) + x_sq.shape[1:])
    out = jnp.nan_to_num(out, nan=0.0)
    for (w, gamma, beta, mean, var) in raw_params:
        y = out @ w
        y = (y - mean) * (gamma / jnp.sqrt(var + _BN_EPS)) + beta
        out = jnp.where(y >= 0, y, _LEAKY_SLOPE * y)
    return out, pad_mask


if __name__ == "__main__":
    # x: (batch, temp=1, num_points, feat) — the module squeezes dim 1 and runs the
    # MLP over the last dim.  mlp1_size defines the LinearLayer stack.
    batch, temp, n_pts, f_in = 2, 1, 16, 16
    mlp1_size = [f_in, 32, 64]

    key = jax.random.PRNGKey(0)
    kx, kp = jax.random.split(key)
    x = jax.random.normal(kx, (batch, temp, n_pts, f_in), dtype=jnp.float32)
    # Exercise the pad_mask (exact zeros) and nan_to_num (NaN) paths.
    x = x.at[0, 0, 0, :].set(0.0)
    x = x.at[1, 0, 3, 2].set(jnp.nan)

    raw_params = init_params(kp, mlp1_size)
    prepped = prepare_params(raw_params)

    out, pad_mask = mlp_container_forward(x, prepped, out_dim=mlp1_size[-1])
    out = jax.block_until_ready(out)

    ref_out, ref_mask = mlp_container_ref(x, raw_params)
    assert out.shape == (batch * temp, n_pts, mlp1_size[-1]), out.shape
    assert out.dtype == jnp.bfloat16, out.dtype
    assert pad_mask.shape == (batch, n_pts, f_in), pad_mask.shape
    assert bool(jnp.array_equal(pad_mask, ref_mask))
    assert bool(jnp.all(jnp.isfinite(out.astype(jnp.float32))))
    # bf16 MXU operands + bf16 epilogue/output vs f32 reference -> loosened tolerance.
    assert bool(jnp.allclose(out.astype(jnp.float32), ref_out, atol=5e-2, rtol=5e-2))

    print("KERNEL_OK")
</pallas_src>

<mosaic_0001>
module attributes {stable_mosaic.version = 11 : i64} {
  func.func @kernel(%arg0: i32, %arg1: memref<32x16xf32, #tpu.memory_space<vmem>>, %arg2: memref<16x32xbf16, #tpu.memory_space<vmem>>, %arg3: memref<1x32xbf16, #tpu.memory_space<vmem>>, %arg4: memref<32x64xbf16, #tpu.memory_space<vmem>>, %arg5: memref<1x64xbf16, #tpu.memory_space<vmem>>, %arg6: memref<32x64xbf16, #tpu.memory_space<vmem>>) attributes {dimension_semantics = [#tpu.dimension_semantics<parallel>], iteration_bounds = array<i64: 1>, scalar_prefetch = 0 : i64, scratch_operands = 0 : i64, tpu.core_type = #tpu.core_type<tc>, window_params = [{transform_indices = @transform_0, window_bounds = array<i64: 32, 16>}, {pipeline_mode = #tpu.pipeline_mode<synchronous>, transform_indices = @transform_1, window_bounds = array<i64: 16, 32>}, {pipeline_mode = #tpu.pipeline_mode<synchronous>, transform_indices = @transform_2, window_bounds = array<i64: 1, 32>}, {pipeline_mode = #tpu.pipeline_mode<synchronous>, transform_indices = @transform_3, window_bounds = array<i64: 32, 64>}, {pipeline_mode = #tpu.pipeline_mode<synchronous>, transform_indices = @transform_4, window_bounds = array<i64: 1, 64>}, {transform_indices = @transform_5, window_bounds = array<i64: 32, 64>}]} {
    %c0 = arith.constant 0 : index
    %c0_0 = arith.constant 0 : index
    %0 = vector.load %arg1[%c0, %c0_0] : memref<32x16xf32, #tpu.memory_space<vmem>>, vector<32x16xf32>
    %1 = arith.cmpf one, %0, %0 : vector<32x16xf32>
    %cst = arith.constant 0.000000e+00 : f32
    %2 = vector.broadcast %cst : f32 to vector<32x16xf32>
    %3 = arith.select %1, %2, %0 : vector<32x16xi1>, vector<32x16xf32>
    %cst_1 = arith.constant 0.000000e+00 : f32
    %cst_2 = arith.constant 3.38953139E+38 : f32
    %4 = arith.subf %cst_1, %cst_2 : f32
    %cst_3 = arith.constant 3.38953139E+38 : f32
    %5 = vector.broadcast %4 : f32 to vector<32x16xf32>
    %6 = arith.maximumf %5, %3 : vector<32x16xf32>
    %7 = vector.broadcast %cst_3 : f32 to vector<32x16xf32>
    %8 = arith.minimumf %7, %6 : vector<32x16xf32>
    %9 = arith.truncf %8 : vector<32x16xf32> to vector<32x16xbf16>
    %c0_4 = arith.constant 0 : index
    %c0_5 = arith.constant 0 : index
    %10 = vector.load %arg2[%c0_4, %c0_5] : memref<16x32xbf16, #tpu.memory_space<vmem>>, vector<16x32xbf16>
    %cst_6 = arith.constant dense<0.000000e+00> : vector<32x32xf32>
    %11 = tpu.matmul %9, %10, %cst_6 {dimension_numbers = #tpu.dot_dimension_numbers<[1], [0], [0], [1], [0, 0, 1, 1], [], []>} : vector<32x16xbf16>, vector<16x32xbf16>, vector<32x32xf32> -> vector<32x32xf32>
    %12 = arith.truncf %11 : vector<32x32xf32> to vector<32x32xbf16>
    %c0_7 = arith.constant 0 : index
    %c0_8 = arith.constant 0 : index
    %13 = vector.load %arg3[%c0_7, %c0_8] : memref<1x32xbf16, #tpu.memory_space<vmem>>, vector<1x32xbf16>
    %14 = vector.broadcast %13 : vector<1x32xbf16> to vector<32x32xbf16>
    %15 = arith.addf %12, %14 : vector<32x32xbf16>
    %cst_9 = arith.constant 1.000980e-02 : bf16
    %16 = vector.broadcast %cst_9 : bf16 to vector<32x32xbf16>
    %17 = arith.mulf %16, %15 : vector<32x32xbf16>
    %18 = arith.maximumf %15, %17 : vector<32x32xbf16>
    %c0_10 = arith.constant 0 : index
    %c0_11 = arith.constant 0 : index
    %19 = vector.load %arg4[%c0_10, %c0_11] : memref<32x64xbf16, #tpu.memory_space<vmem>>, vector<32x64xbf16>
    %cst_12 = arith.constant dense<0.000000e+00> : vector<32x64xf32>
    %20 = tpu.matmul %18, %19, %cst_12 {dimension_numbers = #tpu.dot_dimension_numbers<[1], [0], [0], [1], [0, 0, 1, 1], [], []>} : vector<32x32xbf16>, vector<32x64xbf16>, vector<32x64xf32> -> vector<32x64xf32>
    %21 = arith.truncf %20 : vector<32x64xf32> to vector<32x64xbf16>
    %c0_13 = arith.constant 0 : index
    %c0_14 = arith.constant 0 : index
    %22 = vector.load %arg5[%c0_13, %c0_14] : memref<1x64xbf16, #tpu.memory_space<vmem>>, vector<1x64xbf16>
    %23 = vector.broadcast %22 : vector<1x64xbf16> to vector<32x64xbf16>
    %24 = arith.addf %21, %23 : vector<32x64xbf16>
    %cst_15 = arith.constant 1.000980e-02 : bf16
    %25 = vector.broadcast %cst_15 : bf16 to vector<32x64xbf16>
    %26 = arith.mulf %25, %24 : vector<32x64xbf16>
    %27 = arith.maximumf %24, %26 : vector<32x64xbf16>
    %c0_16 = arith.constant 0 : index
    %c0_17 = arith.constant 0 : index
    %28 = vector.load %arg6[%c0_16, %c0_17] : memref<32x64xbf16, #tpu.memory_space<vmem>>, vector<32x64xbf16>
    tpu.vector_store %arg6[%c0_16, %c0_17], %27 {strides = array<i32>} : memref<32x64xbf16, #tpu.memory_space<vmem>>, vector<32x64xbf16>,
    return
  }
  func.func @transform_0(%arg0: i32) -> (i32, i32) {
    %c0_i32 = arith.constant 0 : i32
    %c0_i32_0 = arith.constant 0 : i32
    return %arg0, %c0_i32 : i32, i32
  }
  func.func @transform_1(%arg0: i32) -> (i32, i32) {
    %c0_i32 = arith.constant 0 : i32
    %c0_i32_0 = arith.constant 0 : i32
    %c0_i32_1 = arith.constant 0 : i32
    return %c0_i32, %c0_i32_0 : i32, i32
  }
  func.func @transform_2(%arg0: i32) -> (i32, i32) {
    %c0_i32 = arith.constant 0 : i32
    %c0_i32_0 = arith.constant 0 : i32
    %c0_i32_1 = arith.constant 0 : i32
    return %c0_i32, %c0_i32_0 : i32, i32
  }
  func.func @transform_3(%arg0: i32) -> (i32, i32) {
    %c0_i32 = arith.constant 0 : i32
    %c0_i32_0 = arith.constant 0 : i32
    %c0_i32_1 = arith.constant 0 : i32
    return %c0_i32, %c0_i32_0 : i32, i32
  }
  func.func @transform_4(%arg0: i32) -> (i32, i32) {
    %c0_i32 = arith.constant 0 : i32
    %c0_i32_0 = arith.constant 0 : i32
    %c0_i32_1 = arith.constant 0 : i32
    return %c0_i32, %c0_i32_0 : i32, i32
  }
  func.func @transform_5(%arg0: i32) -> (i32, i32) {
    %c0_i32 = arith.constant 0 : i32
    %c0_i32_0 = arith.constant 0 : i32
    return %arg0, %c0_i32 : i32, i32
  }
}

</mosaic_0001>

<bundles_post_ra>
// kernel: tpu_custom_call.1
= control target key start
LH: loop header
LB: loop body
LE: loop exit
PB: predicated region body
PF: predicated region fallthrough
CT: control target
= control target key end

     0   :  { %vm53_vm4 = vcmask 130048   ;;  %s386_s0 = inlined_call_operand.vmem [shape: f32[32,16], index: 0, kind: input, shape index: {}]   ;;  %s387_s1 = inlined_call_operand.vmem [shape: bf16[16,32], index: 1, kind: input, shape index: {}]   ;;  %s388_s2 = inlined_call_operand.vmem [shape: bf16[1,32], index: 2, kind: input, shape index: {}]   ;;  %s389_s3 = inlined_call_operand.vmem [shape: bf16[32,64], index: 3, kind: input, shape index: {}]   ;;  %s390_s4 = inlined_call_operand.vmem [shape: bf16[1,64], index: 4, kind: input, shape index: {}]   ;;  %s391_s5 = inlined_call_operand.hbm [shape: bf16[32,64], index: 5, kind: output, shape index: {}]  }
   0x1   :  { %v287_v0 = vld [vmem:[%s387_s1] sm:$0xff]   ;;  %v24_v2 = vld [vmem:[%s386_s0 + $0x8] sm:$0xff]  ;;  %v25_v3 = vld [vmem:[%s386_s0 + $0x10] sm:$0xff] }
   0x2   :  { %v23_v1 = vld [vmem:[%s386_s0] sm:$0xff]  ;;  %270 = vmatprep.subr.bf16.mxu0 %v287_v0  ;;  %vm28_vm1 = vcmp.ne.f32.partialorder %v24_v2, %v24_v2  ;;  %v26_v4 = vld [vmem:[%s386_s0 + $0x18] sm:$0xff]  ;;  %vm29_vm2 = vcmp.ne.f32.partialorder %v25_v3, %v25_v3 }
   0x3   :  { %vm27_vm0 = vcmp.ne.f32.partialorder %v23_v1, %v23_v1  ;;  %271 = vmatpush3.bf16.msra.mxu0 %v287_v0  ;;  %v32_v6 = vsel %vm28_vm1, 0.0, %v24_v2  ;;  %vm30_vm3 = vcmp.ne.f32.partialorder %v26_v4, %v26_v4  ;;  %v33_v7 = vsel %vm29_vm2, 0.0, %v25_v3 }
   0x4   :  { %v31_v5 = vsel %vm27_vm0, 0.0, %v23_v1  ;;  %v249_v9 = vclamps-f32 %v32_v6, 3.3895314e+38  ;;  %v34_v10 = vsel %vm30_vm3, 0.0, %v26_v4  ;;  %v250_v11 = vclamps-f32 %v33_v7, 3.3895314e+38 }
   0x5   :  { %v248_v8 = vclamps-f32 %v31_v5, 3.3895314e+38  ;;  %v251_v12 = vclamps-f32 %v34_v10, 3.3895314e+38 }
   0x6   :  { %10 = vsyncpa [#allocation3], 0  ;;  %v288_v15 = vld [vmem:[%s389_s3] sm:$0xff]   ;;  %v289_v16 = vld [vmem:[%s389_s3 + $0x8] sm:$0xff]   ;;  %v115_v17 = vlaneseq  ;;  %vm141_vm5 = vcmask 261120   ;;  %s314_s7 = smov [#allocation2]  }
   0x7   :  { %v43_v13 = vpack.c.bf16 %v249_v9, %v248_v8  ;;  %v44_v14 = vpack.c.bf16 %v251_v12, %v250_v11  ;;  %276 = vmatprep.subr.bf16.mxu1 %v288_v15  ;;  %v111_v19 = vld [vmem:[%s388_s2] sm:$0x1]  ;;  %s237_s8 = sshll.u32 %s314_s7, 4  ;;  %vm227_vm6 = vcmask 519168   ;;  %s238_s8 = int_to_ptr.vmem [resolvable:$true] %s237_s8 }
   0x8   :  { %277 = vmatpush3.bf16.msra.mxu1 %v288_v15  ;;  %v116_v18 = vshrl.u32 %v115_v17, 7  ;;  %v113_v20 = vpack.i.b16 %v111_v19, %v111_v19  ;;  %v199_v35 = vld [vmem:[%s390_s4] sm:$0x1]  ;;  %s290_s4 = scalar_lea.vmem %s238_s8, 256  ;;  %p295_p1 = scmp.lt.s32.totalorder %s238_s8, %s238_s8 }
   0x9   :  { %272 = vmatprep.mubr.msk.bf16.mxu0 %vm53_vm4, %v43_v13  ;;  %278 = vmatprep.subr.bf16.mxu1 %v289_v16  ;;  %v201_v36 = vpack.i.b16 %v199_v35, %v199_v35  ;;  %p291_p0 = scmp.ne.s32.totalorder %s238_s8, %s290_s4  ;;  %p296_p2 = scmp.lt.s32.totalorder %s290_s4, %s290_s4 }
   0xa   :  { %273 = vmatmul.mubr.msk.bf16.vlgmr.msra.gmra.mrb[0].mxu0 %vm53_vm4, %v44_v14  ;;  %v117_v21 = vsub.s32 0, %v116_v18 }
   0xb   :  { %p297_p3 = por %p296_p2, %p295_p1 }
   0xc   :  { %279 = vmatpush3.bf16.msra.mxu1 %v289_v16  ;;  %v118_v24 = vrot.slane %v113_v20, %v117_v21  ;;  %v206_v39 = vrot.slane %v201_v36, %v117_v21 }
   0xd   :  { %p298_p4 = pnand %p297_p3, %p291_p0 }
  0xdd   :  { %v274_v22 = vpop.f32.mrb[0].mxu0 }
  0xde   :  { %v94_v23 = vpop.f32.mrb[1].mxu0 }
  0xdf   :  { %v275_v25 = vpop.f32.mrb[2].mxu0 }
  0xe0   :  { %v110_v26 = vpack.c.bf16 %v275_v25, %v274_v22  ;;  %v97_v27 = vpop.f32.mrb[3].mxu0 }
  0xe1   :  { %v109_v28 = vpack.c.bf16 %v97_v27, %v94_v23 }
  0xe2   :  { %v120_v29 = vadd.bf16 %v118_v24, %v110_v26 }
  0xe3   :  { %v119_v30 = vadd.bf16 %v118_v24, %v109_v28 }
  0xe4   :  { %v122_v31 = vmul.bf16 1009007652, %v120_v29 }
  0xe5   :  { %v121_v32 = vmul.bf16 1009007652, %v119_v30 }
  0xe6   :  { %v124_v34 = vmax.bf16 %v122_v31, %v120_v29 }
  0xe7   :  { %v123_v33 = vmax.bf16 %v121_v32, %v119_v30 }
  0xe9   :  { %280 = vmatprep.mubr.msk.bf16.mxu1 %vm141_vm5, %v123_v33 }
  0xea   :  { %281 = vmatmul.mubr.msk.bf16.vlgmr.msra.gmra.mrb[0].mxu1 %vm141_vm5, %v124_v34 }
 0x1bd   :  { %v282_v37 = vpop.f32.mrb[0].mxu1 }
 0x1be   :  { %v182_v38 = vpop.f32.mrb[1].mxu1 }
 0x1bf   :  { %v283_v40 = vpop.f32.mrb[2].mxu1 }
 0x1c0   :  { %v198_v41 = vpack.c.bf16 %v283_v40, %v282_v37  ;;  %v185_v42 = vpop.f32.mrb[3].mxu1 }
 0x1c1   :  { %v197_v43 = vpack.c.bf16 %v185_v42, %v182_v38 }
 0x1c2   :  { %v208_v44 = vadd.bf16 %v206_v39, %v198_v41 }
 0x1c3   :  { %v207_v45 = vadd.bf16 %v206_v39, %v197_v43 }
 0x1c4   :  { %v210_v46 = vmul.bf16 1009007652, %v208_v44 }
 0x1c5   :  { %v209_v47 = vmul.bf16 1009007652, %v207_v45 }
 0x1c6   :  { %v212_v48 = vmax.bf16 %v210_v46, %v208_v44 }
 0x1c7   :  { %v211_v49 = vmax.bf16 %v209_v47, %v207_v45 }
 0x1c8   :  { %v261_v50 = vcombine.low %v212_v48, %v212_v48  ;;  %v262_v51 = vcombine.high %v212_v48, %v212_v48 }
 0x1c9   :  { %v259_v52 = vcombine.low %v211_v49, %v211_v49  ;;  %v260_v53 = vcombine.high %v211_v49, %v211_v49 }
 0x1ca   :  { %230 = vst.msk [vmem:[#allocation2 + $0x8] sm:$0xf] %vm227_vm6, %v261_v50  ;;  %231 = vst.msk [vmem:[#allocation2 + $0xc] sm:$0xf] %vm227_vm6, %v262_v51 }
 0x1cb   :  { %228 = vst.msk [vmem:[#allocation2] sm:$0xf] %vm227_vm6, %v259_v52  ;;  %229 = vst.msk [vmem:[#allocation2 + $0x4] sm:$0xf] %vm227_vm6, %v260_v53 }
 0x1cc   :  { %301 = shalt.err (!%p298_p4)
}
 0x1cd   :  { %s302_s11 = scalar_lea.hbm %s391_s5, 256 }
 0x1ce   :  { %p303_p5 = scmp.ne.s32.totalorder %s391_s5, %s302_s11  ;;  %p306_p6 = scmp.lt.u32.totalorder %s302_s11, %s391_s5 }
 0x1d0   :  { %p308_p7 = pnand %p306_p6, %p303_p5 }
 0x1d2   :  { %311 = shalt.err (!%p308_p7)
}
 0x1d3   :  { %s315_s16 = smov 64   ;;  %s316_s17 = smov 4  }
 0x1d4   :  { %243 = dma.vmem_to_hbm [thread:$0]  %s238_s8, 256, %s391_s5, [#allocation3], %s315_s16, %s315_s16, %s316_s17  }
 0x1d5   :  { %312 = dma.done.wait [#allocation3], 256  }
 0x1d6   :  { %313 = vsyncadd [#allocation3], 4294967040 }
 0x1d7   :  { %247 = vsyncpa [#allocation3], 1 }

</bundles_post_ra>
